<compile_context>
chip_gen: v5e
topology: v5e:2x2
jax: 0.10.0
libtpu: 0.0.40
codegen_flags: <defaults>
</compile_context>

<pallas_src>
import jax
import jax.numpy as jnp
from jax.experimental import pallas as pl
from jax.experimental.pallas import tpu as pltpu


_SIX_INV = 1.0 / 6.0
_LANE_WIDTHS = (1024, 512, 256, 128)   # preferred lane-dense layouts, widest first
_TARGET_BLOCK_BYTES = 8 << 20          # ~8 MiB per pipeline buffer


# ----------------------------------------------------------------------------- kernel
def hsigmoid_kernel(x_ref, o_ref):
    # relu6(x + 3) * (1/6) -- pure VPU: add, max, min, mul.  One load + one
    # store per tile; trivially hidden under the DMA pipeline.
    x = x_ref[...]
    o_ref[...] = jnp.minimum(jnp.maximum(x + 3.0, 0.0), 6.0) * _SIX_INV


# ----------------------------------------------------------------------------- helpers
def _round_up(a, b):
    return ((a + b - 1) // b) * b


def _hsigmoid_2d(x2, rows, cols, itemsize):
    """Run the kernel on a lane-dense (rows, cols) slab (cols multiple of 128
    or a single full-array block)."""
    # Block size keyed on bytes so f32/bf16/int8 all sit near the HBM roofline;
    # keep the row count a multiple of 32 for sublane packing of narrow dtypes.
    block_rows = max(32, (_TARGET_BLOCK_BYTES // (cols * itemsize)) // 32 * 32)

    if rows <= 16:
        # Tiny slab: one block equal to the full array (no (8,128) constraint,
        # no grid overhead).
        br, grid_rows = rows, 1
    else:
        # At least two row blocks so both v7x TensorCores stream.  The last
        # block may be ragged: OOB reads are unused, OOB writes are dropped,
        # so no row padding is required.
        br = min(block_rows, _round_up(pl.cdiv(rows, 2), 8))
        grid_rows = pl.cdiv(rows, br)
        if grid_rows > 1 and grid_rows % 2 == 1:
            # Nudge to an even grid for 2-TC load balance.
            br = _round_up(pl.cdiv(rows, grid_rows + 1), 8)
            grid_rows = pl.cdiv(rows, br)

    return pl.pallas_call(
        hsigmoid_kernel,
        out_shape=jax.ShapeDtypeStruct((rows, cols), x2.dtype),
        grid=(grid_rows,),
        in_specs=[pl.BlockSpec((br, cols), lambda i: (i, 0))],
        out_specs=pl.BlockSpec((br, cols), lambda i: (i, 0)),
        input_output_aliases={0: 0},  # inplace: output reuses the input HBM buffer
        compiler_params=pltpu.CompilerParams(
            dimension_semantics=("parallel",),   # shard row blocks across TCs (v7x)
            vmem_limit_bytes=48 << 20,           # 4 x 8 MiB buffers + headroom (< 64 MiB phys)
        ),
    )(x2)


def _hsigmoid_impl(x):
    shape, dtype = x.shape, x.dtype
    n = x.size
    if n == 0:
        return x
    itemsize = jnp.dtype(dtype).itemsize

    flat = x.reshape(-1)

    # Widest lane-dense layout that divides n exactly -> no pad, no trailing
    # slice (each of those is a full extra HBM pass on a bandwidth-bound op).
    for cols in _LANE_WIDTHS:
        if n % cols == 0:
            rows = n // cols
            out2 = _hsigmoid_2d(flat.reshape(rows, cols), rows, cols, itemsize)
            return out2.reshape(shape)

    if n <= _LANE_WIDTHS[0]:
        # Tiny ragged input: one full-array block of shape (1, n).
        out2 = _hsigmoid_2d(flat.reshape(1, n), 1, n, itemsize)
        return out2.reshape(shape)

    # Rare fallback: n not a multiple of 128 -> pad the tail, then slice back.
    # TODO(synk): replace with a small masked-store tail kernel to avoid the
    # extra HBM passes for such sizes.
    cols = 128
    rows = pl.cdiv(n, cols)
    flat = jnp.pad(flat, (0, rows * cols - n))
    out2 = _hsigmoid_2d(flat.reshape(rows, cols), rows, cols, itemsize)
    return out2.reshape(-1)[:n].reshape(shape)


# PyTorch module defaults to inplace=True: donate the input so the Pallas
# output can reuse its HBM buffer.  Callers must not reuse x after the call.
hsigmoid = jax.jit(_hsigmoid_impl, donate_argnums=0)


# ----------------------------------------------------------------------------- main
if __name__ == "__main__":
    # Small NCHW activation tensor; values span the [-3, 3] knee.
    x = 4.0 * jax.random.normal(jax.random.PRNGKey(0), (2, 4, 16, 16), jnp.float32)
    ref = jnp.minimum(jnp.maximum(x + 3.0, 0.0), 6.0) / 6.0   # ref BEFORE donating call
    shape, dtype = x.shape, x.dtype

    out = jax.block_until_ready(hsigmoid(x))
    assert out.shape == shape and out.dtype == dtype
    assert bool(jnp.all(jnp.isfinite(out)))
    assert jnp.allclose(out, ref, atol=1e-6), float(jnp.max(jnp.abs(out - ref)))

    # Exercise the multi-block (grid > 1) path.
    xb = 4.0 * jax.random.normal(jax.random.PRNGKey(1), (2, 8, 32, 64), jnp.float32)
    refb = jnp.minimum(jnp.maximum(xb + 3.0, 0.0), 6.0) / 6.0
    outb = jax.block_until_ready(hsigmoid(xb))
    assert jnp.allclose(outb, refb, atol=1e-6)

    # Exercise the ragged-size fallback path (element count not a multiple of 128).
    xc = 4.0 * jax.random.normal(jax.random.PRNGKey(2), (3, 5, 7, 11), jnp.float32)
    refc = jnp.minimum(jnp.maximum(xc + 3.0, 0.0), 6.0) / 6.0
    outc = jax.block_until_ready(hsigmoid(xc))
    assert jnp.allclose(outc, refc, atol=1e-6)

    print("KERNEL_OK")
</pallas_src>

<mosaic_0001>
module attributes {stable_mosaic.version = 11 : i64} {
  func.func @hsigmoid_kernel(%arg0: i32, %arg1: memref<2x1024xf32, #tpu.memory_space<vmem>>, %arg2: memref<2x1024xf32, #tpu.memory_space<vmem>>) attributes {dimension_semantics = [#tpu.dimension_semantics<parallel>], iteration_bounds = array<i64: 1>, scalar_prefetch = 0 : i64, scratch_operands = 0 : i64, tpu.core_type = #tpu.core_type<tc>, window_params = [{transform_indices = @transform_0, window_bounds = array<i64: 2, 1024>}, {transform_indices = @transform_1, window_bounds = array<i64: 2, 1024>}]} {
    %c0 = arith.constant 0 : index
    %c0_0 = arith.constant 0 : index
    %0 = vector.load %arg1[%c0, %c0_0] : memref<2x1024xf32, #tpu.memory_space<vmem>>, vector<2x1024xf32>
    %cst = arith.constant 3.000000e+00 : f32
    %1 = vector.broadcast %cst : f32 to vector<2x1024xf32>
    %2 = arith.addf %0, %1 : vector<2x1024xf32>
    %cst_1 = arith.constant 0.000000e+00 : f32
    %3 = vector.broadcast %cst_1 : f32 to vector<2x1024xf32>
    %4 = arith.maximumf %2, %3 : vector<2x1024xf32>
    %cst_2 = arith.constant 6.000000e+00 : f32
    %5 = vector.broadcast %cst_2 : f32 to vector<2x1024xf32>
    %6 = arith.minimumf %4, %5 : vector<2x1024xf32>
    %cst_3 = arith.constant 0.166666672 : f32
    %7 = vector.broadcast %cst_3 : f32 to vector<2x1024xf32>
    %8 = arith.mulf %6, %7 : vector<2x1024xf32>
    %c0_4 = arith.constant 0 : index
    %c0_5 = arith.constant 0 : index
    %9 = vector.load %arg2[%c0_4, %c0_5] : memref<2x1024xf32, #tpu.memory_space<vmem>>, vector<2x1024xf32>
    tpu.vector_store %arg2[%c0_4, %c0_5], %8 {strides = array<i32>} : memref<2x1024xf32, #tpu.memory_space<vmem>>, vector<2x1024xf32>,
    return
  }
  func.func @transform_0(%arg0: i32) -> (i32, i32) {
    %c0_i32 = arith.constant 0 : i32
    %c0_i32_0 = arith.constant 0 : i32
    return %arg0, %c0_i32 : i32, i32
  }
  func.func @transform_1(%arg0: i32) -> (i32, i32) {
    %c0_i32 = arith.constant 0 : i32
    %c0_i32_0 = arith.constant 0 : i32
    return %arg0, %c0_i32 : i32, i32
  }
}

</mosaic_0001>

<bundles_post_ra>
// kernel: _hsigmoid_impl.1
= control target key start
LH: loop header
LB: loop body
LE: loop exit
PB: predicated region body
PF: predicated region fallthrough
CT: control target
= control target key end

     0   :  { %s46_s0 = inlined_call_operand.vmem [shape: f32[2,1024], index: 0, kind: input, shape index: {}, may-alias: {0,1}]   ;;  %s47_s1 = inlined_call_operand.vmem [shape: f32[2,1024], index: 1, kind: output, shape index: {}, may-alias: {0,1}]  }
   0x1   :  { %v8_v0 = vld [vmem:[%s46_s0] sm:$0xff]  ;;  %v9_v1 = vld [vmem:[%s46_s0 + $0x8] sm:$0xff] }
   0x2   :  { %v10_v2 = vadd.f32 3.0, %v8_v0  ;;  %v11_v3 = vadd.f32 3.0, %v9_v1 }
   0x4   :  { %v12_v4 = vmax.f32 %v10_v2, 0.0  ;;  %v13_v5 = vmax.f32 %v11_v3, 0.0 }
   0x6   :  { %v14_v6 = vmin.f32 %v12_v4, 6.0  ;;  %v15_v7 = vmin.f32 %v13_v5, 6.0 }
   0x8   :  { %v16_v8 = vmul.f32 0.16666667, %v14_v6  ;;  %v17_v9 = vmul.f32 0.16666667, %v15_v7 }
   0xa   :  { %18 = vst [vmem:[%s47_s1] sm:$0xff] %v16_v8 }
   0xb   :  { %19 = vst [vmem:[%s47_s1 + $0x8] sm:$0xff] %v17_v9 }

</bundles_post_ra>
